<compile_context>
chip_gen: v5e
topology: v5e:2x2
jax: 0.10.0
libtpu: 0.0.40
codegen_flags: <defaults>
</compile_context>

<pallas_src>
import jax
import jax.numpy as jnp
from jax import lax
from jax.experimental import pallas as pl
from jax.experimental.pallas import tpu as pltpu

sentences = [
    'le chien aboie fort dans la maison', 'le chien aboie dans le jardin',
    'le grand chien aboie dans le jardin', 'le petit chien aboie dans la maison',
    'le chien fatigué dort dans la maison', 'le vieux chien dort dans le jardin',
    'le chien affamé mange dans la maison', 'le chien joyeux joue dans le jardin',
    'le chat gris dort dans la maison', 'le chat noir dort dans le jardin',
    'le jeune chat miaule dans le jardin', 'le petit chat miaule dans la maison',
    'le chat siamois miaule dans le jardin', 'le gros chat miaule dans la maison',
    'le chien aboie quand chat miaule', 'le chat miaule quand chien aboie',
    'le chien court quand chat dort', 'le chat dort quand chien joue',
]
sentence_words = [s.split() for s in sentences]
corpus = [w for sent in sentence_words for w in sent]
vocab = sorted(set(corpus))           # sorted for determinism
vocab_size = len(vocab)               # 26
word_to_ix = {w: i for i, w in enumerate(vocab)}

EMBEDDING_DIM = 32
CONTEXT_SIZE = 4                      # CBOW window of 2 on each side

TB = 128                              # batch tile: full MXU M dim (was 8)
LANES = 128                           # lane width for padded vocab dim


def cbow_kernel(idx_ref, m_ref, b_ref, out_ref):
    """idx_ref: VMEM (TB, C) int32 context indices (one row per example).
    m_ref  : VMEM (Vp, Vp) fused matrix (emb @ W^T) / C, zero-padded.
    b_ref  : VMEM (1, Vp) zero-padded bias.
    out_ref: VMEM (TB, Vp) logits (lane-dense, unmasked stores).
    """
    TBk, C = idx_ref.shape
    Vp = m_ref.shape[0]

    idx = idx_ref[...]                                              # (TB, C)
    lane = lax.broadcasted_iota(jnp.int32, (TBk, Vp), 1)            # (TB, Vp)

    # Count matrix: counts[b, v] = #occurrences of vocab id v in context b.
    # (1/C is already folded into m_ref by pad_params.)
    counts = jnp.zeros((TBk, Vp), jnp.float32)
    for c in range(C):                    # C is small and static -> unrolled
        counts = counts + (lane == idx[:, c:c + 1]).astype(jnp.float32)

    # Single fused MXU matmul: (TB, Vp) @ (Vp, Vp) -> (TB, Vp).
    logits = jnp.dot(counts, m_ref[...], preferred_element_type=jnp.float32)
    out_ref[...] = logits + b_ref[...]


def pad_params(embeddings, weight, bias, context_size):
    """Fuse & pad parameters once (outside the hot path).

    Returns:
      m_p: (Vp, Vp) f32, (emb @ W^T) / C zero-padded on both axes.
      b_p: (1, Vp)  f32, bias zero-padded.
    """
    V, E = embeddings.shape
    Vp = max(LANES, pl.cdiv(V, LANES) * LANES)
    fused = (embeddings @ weight.T) / float(context_size)          # (V, V)
    m_p = jnp.zeros((Vp, Vp), jnp.float32).at[:V, :V].set(fused)
    b_p = jnp.zeros((1, Vp), jnp.float32).at[0, :V].set(bias)
    return m_p, b_p


def cbow_forward_batch(context_idxs, m_p, b_p, vocab_size):
    """context_idxs: (B, C) int; returns (B, vocab_size) f32 logits."""
    B, C = context_idxs.shape
    Vp = m_p.shape[0]
    Bp = pl.cdiv(B, TB) * TB
    idx = jnp.zeros((Bp, C), jnp.int32).at[:B].set(context_idxs.astype(jnp.int32))

    out = pl.pallas_call(
        cbow_kernel,
        out_shape=jax.ShapeDtypeStruct((Bp, Vp), jnp.float32),
        grid=(Bp // TB,),
        in_specs=[
            pl.BlockSpec((TB, C), lambda i: (i, 0)),
            pl.BlockSpec((Vp, Vp), lambda i: (0, 0)),
            pl.BlockSpec((1, Vp), lambda i: (0, 0)),
        ],
        out_specs=pl.BlockSpec((TB, Vp), lambda i: (i, 0)),
        compiler_params=pltpu.CompilerParams(
            dimension_semantics=("parallel",)),   # shard batch tiles over TCs (v7x)
    )(idx, m_p, b_p)
    return out[:B, :vocab_size]


def cbow_forward(context_idxs, m_p, b_p, vocab_size):
    """PyTorch-equivalent single-context forward: (C,) -> (vocab_size,).

    NOTE: a 1-row call is dominated by pallas_call launch + DMA; batch
    contexts with cbow_forward_batch in any hot loop.
    """
    return cbow_forward_batch(context_idxs[None, :], m_p, b_p, vocab_size)[0]


if __name__ == "__main__":
    key = jax.random.PRNGKey(0)
    k_emb, k_w, k_b = jax.random.split(key, 3)

    # nn.Embedding default init: N(0, 1)
    embeddings = jax.random.normal(k_emb, (vocab_size, EMBEDDING_DIM), jnp.float32)
    # nn.Linear default init: U(-1/sqrt(fan_in), 1/sqrt(fan_in))
    bound = 1.0 / (EMBEDDING_DIM ** 0.5)
    weight = jax.random.uniform(k_w, (vocab_size, EMBEDDING_DIM), jnp.float32,
                                minval=-bound, maxval=bound)
    bias = jax.random.uniform(k_b, (vocab_size,), jnp.float32,
                              minval=-bound, maxval=bound)

    # Fuse + pad parameters once (outside the hot path).
    m_p, b_p = pad_params(embeddings, weight, bias, CONTEXT_SIZE)

    # Build ALL CBOW contexts (window 2) from the corpus -> one batched call.
    contexts = []
    for words in sentence_words:
        for i in range(2, len(words) - 2):
            ctx = [words[i - 2], words[i - 1], words[i + 1], words[i + 2]]
            contexts.append([word_to_ix[w] for w in ctx])
    ctx_batch = jnp.array(contexts, dtype=jnp.int32)          # (49, 4)
    B = ctx_batch.shape[0]
    assert ctx_batch.shape == (B, CONTEXT_SIZE)

    # Batched forward (whole corpus of contexts in one pallas_call).
    logits_batch = cbow_forward_batch(ctx_batch, m_p, b_p, vocab_size)
    logits_batch = jax.block_until_ready(logits_batch)

    # Single-context forward matching the PyTorch module interface.
    context_words = ['le', 'chien', 'fort', 'dans']   # around 'aboie', sentence 0
    context_idxs = jnp.array([word_to_ix[w] for w in context_words], dtype=jnp.int32)
    logits_single = cbow_forward(context_idxs, m_p, b_p, vocab_size)
    logits_single = jax.block_until_ready(logits_single)

    # Pure-JAX references (unfused, exactly the PyTorch computation order).
    ref_batch = embeddings[ctx_batch].mean(axis=1) @ weight.T + bias
    ref_single = embeddings[context_idxs].mean(axis=0) @ weight.T + bias

    assert logits_batch.shape == (B, vocab_size)
    assert logits_single.shape == (vocab_size,)
    assert jnp.allclose(logits_batch, ref_batch, atol=1e-5, rtol=1e-5)
    assert jnp.allclose(logits_single, ref_single, atol=1e-5, rtol=1e-5)

    print("KERNEL_OK")
</pallas_src>

<mosaic_0001>
module attributes {stable_mosaic.version = 11 : i64} {
  func.func @cbow_kernel(%arg0: i32, %arg1: memref<128x4xi32, #tpu.memory_space<vmem>>, %arg2: memref<128x128xf32, #tpu.memory_space<vmem>>, %arg3: memref<1x128xf32, #tpu.memory_space<vmem>>, %arg4: memref<128x128xf32, #tpu.memory_space<vmem>>) attributes {dimension_semantics = [#tpu.dimension_semantics<parallel>], iteration_bounds = array<i64: 1>, scalar_prefetch = 0 : i64, scratch_operands = 0 : i64, tpu.core_type = #tpu.core_type<tc>, window_params = [{transform_indices = @transform_0, window_bounds = array<i64: 128, 4>}, {pipeline_mode = #tpu.pipeline_mode<synchronous>, transform_indices = @transform_1, window_bounds = array<i64: 128, 128>}, {pipeline_mode = #tpu.pipeline_mode<synchronous>, transform_indices = @transform_2, window_bounds = array<i64: 1, 128>}, {transform_indices = @transform_3, window_bounds = array<i64: 128, 128>}]} {
    %c0 = arith.constant 0 : index
    %c0_0 = arith.constant 0 : index
    %0 = vector.load %arg1[%c0, %c0_0] : memref<128x4xi32, #tpu.memory_space<vmem>>, vector<128x4xi32>
    %1 = tpu.iota {dimensions = array<i32: 1>} : vector<128x128xi32>
    %cst = arith.constant 0.000000e+00 : f32
    %2 = vector.broadcast %cst : f32 to vector<128x128xf32>
    %3 = vector.extract_strided_slice %0 {offsets = [0, 0], sizes = [128, 1], strides = [1, 1]} : vector<128x4xi32> to vector<128x1xi32>
    %4 = vector.broadcast %3 : vector<128x1xi32> to vector<128x128xi32>
    %5 = arith.cmpi eq, %1, %4 : vector<128x128xi32>
    %6 = arith.extui %5 : vector<128x128xi1> to vector<128x128xi32>
    %7 = arith.sitofp %6 : vector<128x128xi32> to vector<128x128xf32>
    %8 = arith.addf %2, %7 : vector<128x128xf32>
    %9 = vector.extract_strided_slice %0 {offsets = [0, 1], sizes = [128, 1], strides = [1, 1]} : vector<128x4xi32> to vector<128x1xi32>
    %10 = vector.broadcast %9 : vector<128x1xi32> to vector<128x128xi32>
    %11 = arith.cmpi eq, %1, %10 : vector<128x128xi32>
    %12 = arith.extui %11 : vector<128x128xi1> to vector<128x128xi32>
    %13 = arith.sitofp %12 : vector<128x128xi32> to vector<128x128xf32>
    %14 = arith.addf %8, %13 : vector<128x128xf32>
    %15 = vector.extract_strided_slice %0 {offsets = [0, 2], sizes = [128, 1], strides = [1, 1]} : vector<128x4xi32> to vector<128x1xi32>
    %16 = vector.broadcast %15 : vector<128x1xi32> to vector<128x128xi32>
    %17 = arith.cmpi eq, %1, %16 : vector<128x128xi32>
    %18 = arith.extui %17 : vector<128x128xi1> to vector<128x128xi32>
    %19 = arith.sitofp %18 : vector<128x128xi32> to vector<128x128xf32>
    %20 = arith.addf %14, %19 : vector<128x128xf32>
    %21 = vector.extract_strided_slice %0 {offsets = [0, 3], sizes = [128, 1], strides = [1, 1]} : vector<128x4xi32> to vector<128x1xi32>
    %22 = vector.broadcast %21 : vector<128x1xi32> to vector<128x128xi32>
    %23 = arith.cmpi eq, %1, %22 : vector<128x128xi32>
    %24 = arith.extui %23 : vector<128x128xi1> to vector<128x128xi32>
    %25 = arith.sitofp %24 : vector<128x128xi32> to vector<128x128xf32>
    %26 = arith.addf %20, %25 : vector<128x128xf32>
    %c0_1 = arith.constant 0 : index
    %c0_2 = arith.constant 0 : index
    %27 = vector.load %arg2[%c0_1, %c0_2] : memref<128x128xf32, #tpu.memory_space<vmem>>, vector<128x128xf32>
    %cst_3 = arith.constant dense<0.000000e+00> : vector<128x128xf32>
    %28 = tpu.matmul %26, %27, %cst_3 {dimension_numbers = #tpu.dot_dimension_numbers<[1], [0], [0], [1], [0, 0, 1, 1], [], []>} : vector<128x128xf32>, vector<128x128xf32>, vector<128x128xf32> -> vector<128x128xf32>
    %c0_4 = arith.constant 0 : index
    %c0_5 = arith.constant 0 : index
    %29 = vector.load %arg3[%c0_4, %c0_5] : memref<1x128xf32, #tpu.memory_space<vmem>>, vector<1x128xf32>
    %30 = vector.broadcast %29 : vector<1x128xf32> to vector<128x128xf32>
    %31 = arith.addf %28, %30 : vector<128x128xf32>
    %c0_6 = arith.constant 0 : index
    %c0_7 = arith.constant 0 : index
    %32 = vector.load %arg4[%c0_6, %c0_7] : memref<128x128xf32, #tpu.memory_space<vmem>>, vector<128x128xf32>
    tpu.vector_store %arg4[%c0_6, %c0_7], %31 {strides = array<i32>} : memref<128x128xf32, #tpu.memory_space<vmem>>, vector<128x128xf32>,
    return
  }
  func.func @transform_0(%arg0: i32) -> (i32, i32) {
    %c0_i32 = arith.constant 0 : i32
    %c0_i32_0 = arith.constant 0 : i32
    return %arg0, %c0_i32 : i32, i32
  }
  func.func @transform_1(%arg0: i32) -> (i32, i32) {
    %c0_i32 = arith.constant 0 : i32
    %c0_i32_0 = arith.constant 0 : i32
    %c0_i32_1 = arith.constant 0 : i32
    return %c0_i32, %c0_i32_0 : i32, i32
  }
  func.func @transform_2(%arg0: i32) -> (i32, i32) {
    %c0_i32 = arith.constant 0 : i32
    %c0_i32_0 = arith.constant 0 : i32
    %c0_i32_1 = arith.constant 0 : i32
    return %c0_i32, %c0_i32_0 : i32, i32
  }
  func.func @transform_3(%arg0: i32) -> (i32, i32) {
    %c0_i32 = arith.constant 0 : i32
    %c0_i32_0 = arith.constant 0 : i32
    return %arg0, %c0_i32 : i32, i32
  }
}

</mosaic_0001>

<bundles_post_ra>
// kernel: tpu_custom_call.1
= control target key start
LH: loop header
LB: loop body
LE: loop exit
PB: predicated region body
PF: predicated region fallthrough
CT: control target
= control target key end

     0   :  { %v774_v3 = vmov 0   ;;  %s1220_s0 = inlined_call_operand.vmem [shape: s32[128,4], index: 0, kind: input, shape index: {}]   ;;  %s1221_s1 = inlined_call_operand.vmem [shape: f32[128,128], index: 1, kind: input, shape index: {}]   ;;  %s1222_s2 = inlined_call_operand.vmem [shape: f32[1,128], index: 2, kind: input, shape index: {}]   ;;  %s1223_s3 = inlined_call_operand.hbm [shape: f32[128,128], index: 3, kind: output, shape index: {}]  }
   0x1   :  { %v805_v0 = vld [vmem:[%s1220_s0 + $0x20] sm:$0xff]  ;;  %v810_v1 = vld [vmem:[%s1220_s0 + $0x10] sm:$0xff]  ;;  %722 = vset.pattern.permute.xlu2 %v774_v3  ;;  %721 = vset.pattern.permute.xlu1 %v774_v3 }
   0x2   :  { %v815_v2 = vld [vmem:[%s1220_s0] sm:$0xff]  ;;  %720 = vset.pattern.permute.xlu0 %v774_v3  ;;  %46 = vperm.xlu2 %722, %v805_v0  }
   0x3   :  { %40 = vperm.xlu1 %721, %v810_v1   ;;  %34 = vperm.xlu0 %720, %v815_v2  }
   0x4   :  { %8 = vsyncpa [#allocation3], 0  ;;  %v823_v4 = vld [vmem:[%s1220_s0 + $0x28] sm:$0xff]  ;;  %v828_v5 = vld [vmem:[%s1220_s0 + $0x18] sm:$0xff]  ;;  %v775_v17 = vmov 1   ;;  %v776_v18 = vmov 3   ;;  %v31_v27 = vlaneseq }
   0x5   :  { %v833_v6 = vld [vmem:[%s1220_s0 + $0x8] sm:$0xff]  ;;  %v23_v7 = vld [vmem:[%s1220_s0 + $0x40] sm:$0xff]  ;;  %v844_v8 = vld [vmem:[%s1220_s0 + $0x38] sm:$0xff]  ;;  %v777_v19 = vmov 2   ;;  %v778_v33 = vmov 0.0   ;;  %s588_s24 = sshll.u32 %s1223_s3, 4  ;;  %s589_s24 = int_to_ptr.hbm [resolvable:$true] %s588_s24 }
   0x6   :  { %v849_v9 = vld [vmem:[%s1220_s0 + $0x30] sm:$0xff]  ;;  %v856_v10 = vld [vmem:[%s1220_s0 + $0x58] sm:$0xff]  ;;  %v24_v12 = vld [vmem:[%s1220_s0 + $0x48] sm:$0xff]  ;;  %v933_v30 = vand.u32 127, %v31_v27  ;;  %s780_s25 = smov 128   ;;  %s781_s26 = smov 8  }
   0x7   :  { %v861_v11 = vld [vmem:[%s1220_s0 + $0x50] sm:$0xff]  ;;  %v28_v14 = vld [vmem:[%s1220_s0 + $0x68] sm:$0xff]  ;;  %v27_v15 = vld [vmem:[%s1220_s0 + $0x60] sm:$0xff] }
   0x8   :  { %v871_v13 = vld [vmem:[%s1220_s0 + $0x70] sm:$0xff]  ;;  %v883_v16 = vld [vmem:[%s1220_s0 + $0x78] sm:$0xff]  ;;  %v494_v46 = vld [vmem:[%s1221_s1 + $0x68] sm:$0xff] }
   0x9   :  { %v496_v41 = vld [vmem:[%s1221_s1 + $0x78] sm:$0xff]  ;;  %v495_v45 = vld [vmem:[%s1221_s1 + $0x70] sm:$0xff]  ;;  %v493_v47 = vld [vmem:[%s1221_s1 + $0x60] sm:$0xff] }
   0xa   :  { %49 = vperm.xlu2 %722, %v823_v4   ;;  %665 = vmatpush.msra.mxu2 %v496_v41  ;;  %v492_v52 = vld [vmem:[%s1221_s1 + $0x58] sm:$0xff]  ;;  %v491_v55 = vld [vmem:[%s1221_s1 + $0x50] sm:$0xff]  ;;  %v490_v56 = vld [vmem:[%s1221_s1 + $0x48] sm:$0xff] }
   0xb   :  { %43 = vperm.xlu1 %721, %v828_v5   ;;  %37 = vperm.xlu0 %720, %v833_v6   ;;  %v489_v57 = vld [vmem:[%s1221_s1 + $0x40] sm:$0xff]  ;;  %v488_v62 = vld [vmem:[%s1221_s1 + $0x38] sm:$0xff]  ;;  %v486_v3 = vld [vmem:[%s1221_s1 + $0x28] sm:$0xff] }
   0xc   :  { %666 = vmatpush.msra.mxu3 %v496_v41  ;;  %668 = vmatpush.msra.mxu2 %v495_v45 }
   0xd   :  { %664 = vmatpush.msra.mxu1 %v496_v41  ;;  %501 = vmatpush.msra.mxu0 %v496_v41 }
   0xe   :  { %669 = vmatpush.msra.mxu3 %v495_v45  ;;  %671 = vmatpush.msra.mxu2 %v494_v46 }
   0xf   :  { %667 = vmatpush.msra.mxu1 %v495_v45  ;;  %502 = vmatpush.msra.mxu0 %v495_v45 }
  0x10   :  { %672 = vmatpush.msra.mxu3 %v494_v46  ;;  %674 = vmatpush.msra.mxu2 %v493_v47 }
  0x11   :  { %670 = vmatpush.msra.mxu1 %v494_v46  ;;  %503 = vmatpush.msra.mxu0 %v494_v46 }
  0x12   :  { %58 = vperm.xlu2 %722, %v23_v7   ;;  %675 = vmatpush.msra.mxu3 %v493_v47 }
  0x13   :  { %55 = vperm.xlu1 %721, %v844_v8   ;;  %52 = vperm.xlu0 %720, %v849_v9  }
  0x14   :  { %677 = vmatpush.msra.mxu2 %v492_v52  ;;  %678 = vmatpush.msra.mxu3 %v492_v52 }
  0x15   :  { %673 = vmatpush.msra.mxu1 %v493_v47  ;;  %504 = vmatpush.msra.mxu0 %v493_v47 }
  0x16   :  { %680 = vmatpush.msra.mxu2 %v491_v55  ;;  %681 = vmatpush.msra.mxu3 %v491_v55 }
  0x17   :  { %676 = vmatpush.msra.mxu1 %v492_v52  ;;  %505 = vmatpush.msra.mxu0 %v492_v52 }
  0x18   :  { %683 = vmatpush.msra.mxu2 %v490_v56  ;;  %684 = vmatpush.msra.mxu3 %v490_v56 }
  0x19   :  { %679 = vmatpush.msra.mxu1 %v491_v55  ;;  %506 = vmatpush.msra.mxu0 %v491_v55 }
  0x1a   :  { %67 = vperm.xlu2 %722, %v856_v10   ;;  %686 = vmatpush.msra.mxu2 %v489_v57 }
  0x1b   :  { %64 = vperm.xlu1 %721, %v861_v11   ;;  %61 = vperm.xlu0 %720, %v24_v12  }
  0x1c   :  { %687 = vmatpush.msra.mxu3 %v489_v57  ;;  %689 = vmatpush.msra.mxu2 %v488_v62 }
  0x1d   :  { %682 = vmatpush.msra.mxu1 %v490_v56  ;;  %507 = vmatpush.msra.mxu0 %v490_v56 }
  0x1e   :  { %690 = vmatpush.msra.mxu3 %v488_v62 }
  0x1f   :  { %685 = vmatpush.msra.mxu1 %v489_v57  ;;  %508 = vmatpush.msra.mxu0 %v489_v57 }
  0x21   :  { %688 = vmatpush.msra.mxu1 %v488_v62  ;;  %509 = vmatpush.msra.mxu0 %v488_v62 }
  0x22   :  { %76 = vperm.xlu2 %722, %v871_v13  }
  0x23   :  { %73 = vperm.xlu1 %721, %v28_v14   ;;  %70 = vperm.xlu0 %720, %v27_v15  }
  0x2a   :  { %724 = vset.pattern.permute.xlu2 %v775_v17 }
  0x2b   :  { %723 = vset.pattern.permute.xlu1 %v775_v17  ;;  %79 = vperm.xlu0 %720, %v883_v16  }
  0x2c   :  { %149 = vperm.xlu2 %724, %v833_v6   ;;  %146 = vperm.xlu1 %723, %v815_v2  }
  0x33   :  { %727 = vset.pattern.permute.xlu0 %v776_v18 }
  0x34   :  { %158 = vperm.xlu2 %724, %v805_v0   ;;  %155 = vperm.xlu1 %723, %v828_v5  }
  0x35   :  { %394 = vperm.xlu0 %727, %v23_v7  }
  0x3c   :  { %164 = vperm.xlu2 %724, %v849_v9   ;;  %161 = vperm.xlu1 %723, %v823_v4  }
  0x3d   :  { %728 = vset.pattern.permute.xlu0 %v775_v17 }
  0x3e   :  { %152 = vperm.xlu0 %728, %v810_v1  }
  0x44   :  { %173 = vperm.xlu2 %724, %v24_v12   ;;  %170 = vperm.xlu1 %723, %v23_v7  }
  0x46   :  { %167 = vperm.xlu0 %728, %v844_v8  }
  0x4c   :  { %182 = vperm.xlu2 %724, %v27_v15   ;;  %179 = vperm.xlu1 %723, %v856_v10  }
  0x4e   :  { %176 = vperm.xlu0 %728, %v861_v11  }
  0x54   :  { %726 = vset.pattern.permute.xlu2 %v777_v19  ;;  %725 = vset.pattern.permute.xlu1 %v777_v19 }
  0x55   :  { %294 = vperm.xlu2 %726, %v27_v15   ;;  %282 = vperm.xlu1 %725, %v23_v7  }
  0x56   :  { %185 = vperm.xlu0 %728, %v28_v14  }
  0x5c   :  { %v47_v20 = vpop.permute.xlu2 %46 }
  0x5d   :  { %258 = vperm.xlu2 %726, %v815_v2   ;;  %729 = vset.pattern.permute.xlu1 %v776_v18  ;;  %vm85_vm2 = vcmp.eq.s32.totalorder %v933_v30, %v47_v20  ;;  %v481_v20 = vld [vmem:[%s1221_s1] sm:$0xff] }
  0x5e   :  { %188 = vperm.xlu0 %728, %v871_v13   ;;  %406 = vperm.xlu1 %729, %v27_v15   ;;  %v604_v42 = vsel %vm85_vm2, 1.0, %v778_v33  ;;  %v483_v15 = vld [vmem:[%s1221_s1 + $0x10] sm:$0xff] }
  0x64   :  { %v905_v21 = vpop.permute.xlu2 %49 }
  0x65   :  { %285 = vperm.xlu2 %726, %v24_v12   ;;  %vm86_vm10 = vcmp.eq.s32.totalorder %v933_v30, %v905_v21 }
  0x66   :  { %733 = vset.pattern.permute.xlu0 %v777_v19  ;;  %730 = vset.pattern.permute.xlu1 %v777_v19  ;;  %v605_v21 = vsel %vm86_vm10, 1.0, %v778_v33 }
  0x67   :  { %297 = vperm.xlu0 %733, %v28_v14   ;;  %270 = vperm.xlu1 %730, %v805_v0  }
  0x6c   :  { %v910_v22 = vpop.permute.xlu2 %58 }
  0x6d   :  { %732 = vset.pattern.permute.xlu2 %v776_v18 }
  0x6e   :  { %382 = vperm.xlu2 %732, %v805_v0  }
  0x6f   :  { %264 = vperm.xlu0 %733, %v810_v1   ;;  %731 = vset.pattern.permute.xlu1 %v776_v18 }
  0x70   :  { %370 = vperm.xlu1 %731, %v815_v2   ;;  %v487_v2 = vld [vmem:[%s1221_s1 + $0x30] sm:$0xff] }
  0x71   :  { %692 = vmatpush.msra.mxu2 %v487_v2  ;;  %693 = vmatpush.msra.mxu3 %v487_v2 }
  0x72   :  { %691 = vmatpush.msra.mxu1 %v487_v2  ;;  %510 = vmatpush.msra.mxu0 %v487_v2 }
  0x73   :  { %695 = vmatpush.msra.mxu2 %v486_v3  ;;  %696 = vmatpush.msra.mxu3 %v486_v3 }
  0x74   :  { %v917_v23 = vpop.permute.xlu2 %67  ;;  %694 = vmatpush.msra.mxu1 %v486_v3  ;;  %511 = vmatpush.msra.mxu0 %v486_v3 }
  0x75   :  { %v919_v24 = vpop.permute.xlu1 %40  ;;  %v921_v25 = vpop.permute.xlu0 %34 }
  0x76   :  { %409 = vperm.xlu2 %732, %v28_v14   ;;  %vm83_vm11 = vcmp.eq.s32.totalorder %v933_v30, %v919_v24 }
  0x77   :  { %739 = vset.pattern.permute.xlu0 %v776_v18  ;;  %v602_v24 = vsel %vm83_vm11, 1.0, %v778_v33 }
  0x78   :  { %397 = vperm.xlu1 %731, %v24_v12   ;;  %373 = vperm.xlu0 %739, %v833_v6  }
  0x7c   :  { %v925_v26 = vpop.permute.xlu2 %76 }
  0x7d   :  { %v927_v28 = vpop.permute.xlu1 %43  ;;  %v38_v29 = vpop.permute.xlu0 %37 }
  0x7e   :  { %735 = vset.pattern.permute.xlu2 %v777_v19  ;;  %vm82_vm0 = vcmp.eq.s32.totalorder %v933_v30, %v38_v29  ;;  %vm84_vm8 = vcmp.eq.s32.totalorder %v933_v30, %v927_v28 }
  0x7f   :  { %273 = vperm.xlu2 %735, %v823_v4   ;;  %v601_v34 = vsel %vm82_vm0, 1.0, %v778_v33  ;;  %v603_v12 = vsel %vm84_vm8, 1.0, %v778_v33  ;;  %vm92_vm0 = vcmp.eq.s32.totalorder %v933_v30, %v917_v23 }
  0x80   :  { %734 = vset.pattern.permute.xlu1 %v777_v19  ;;  %388 = vperm.xlu0 %739, %v849_v9  }
  0x81   :  { %261 = vperm.xlu1 %734, %v833_v6  }
  0x85   :  { %v937_v31 = vpop.permute.xlu1 %55  ;;  %v53_v32 = vpop.permute.xlu0 %52 }
  0x86   :  { %v150_v35 = vpop.permute.xlu2 %149  ;;  %vm87_vm4 = vcmp.eq.s32.totalorder %v933_v30, %v53_v32  ;;  %vm88_vm14 = vcmp.eq.s32.totalorder %v933_v30, %v937_v31 }
  0x87   :  { %vm194_vm1 = vcmp.eq.s32.totalorder %v933_v30, %v150_v35  ;;  %300 = vperm.xlu2 %735, %v871_v13   ;;  %v606_v50 = vsel %vm87_vm4, 1.0, %v778_v33 }
  0x88   :  { %v617_v36 = vsel %vm194_vm1, 1.0, %v778_v33  ;;  %379 = vperm.xlu0 %739, %v828_v5  }
  0x89   :  { %v944_v37 = vadd.f32 %v617_v36, %v601_v34  ;;  %288 = vperm.xlu1 %734, %v861_v11  }
  0x8d   :  { %v948_v38 = vpop.permute.xlu1 %64  ;;  %v62_v39 = vpop.permute.xlu0 %61 }
  0x8e   :  { %v159_v40 = vpop.permute.xlu2 %158  ;;  %vm90_vm6 = vcmp.eq.s32.totalorder %v933_v30, %v62_v39 }
  0x8f   :  { %vm197_vm3 = vcmp.eq.s32.totalorder %v933_v30, %v159_v40  ;;  %737 = vset.pattern.permute.xlu2 %v776_v18  ;;  %v609_v59 = vsel %vm90_vm6, 1.0, %v778_v33 }
  0x90   :  { %v620_v43 = vsel %vm197_vm3, 1.0, %v778_v33  ;;  %400 = vperm.xlu2 %737, %v861_v11   ;;  %vm89_vm3 = vcmp.eq.s32.totalorder %v933_v30, %v910_v22 }
  0x91   :  { %v958_v44 = vadd.f32 %v620_v43, %v604_v42  ;;  %736 = vset.pattern.permute.xlu1 %v776_v18  ;;  %v611_v42 = vsel %vm92_vm0, 1.0, %v778_v33 }
  0x92   :  { %385 = vperm.xlu1 %736, %v823_v4   ;;  %v485_v4 = vld [vmem:[%s1221_s1 + $0x20] sm:$0xff] }
  0x93   :  { %698 = vmatpush.msra.mxu2 %v485_v4  ;;  %699 = vmatpush.msra.mxu3 %v485_v4 }
  0x94   :  { %697 = vmatpush.msra.mxu1 %v485_v4  ;;  %512 = vmatpush.msra.mxu0 %v485_v4 }
  0x95   :  { %v972_v48 = vpop.permute.xlu1 %73  ;;  %v974_v49 = vpop.permute.xlu0 %70 }
  0x96   :  { %v165_v51 = vpop.permute.xlu2 %164  ;;  %vm93_vm6 = vcmp.eq.s32.totalorder %v933_v30, %v974_v49  ;;  %vm94_vm11 = vcmp.eq.s32.totalorder %v933_v30, %v972_v48 }
  0x97   :  { %vm199_vm5 = vcmp.eq.s32.totalorder %v933_v30, %v165_v51 }
  0x98   :  { %v622_v53 = vsel %vm199_vm5, 1.0, %v778_v33  ;;  %738 = vset.pattern.permute.xlu2 %v775_v17  ;;  %v482_v17 = vld [vmem:[%s1221_s1 + $0x8] sm:$0xff] }
  0x99   :  { %v983_v54 = vadd.f32 %v622_v53, %v606_v50  ;;  %191 = vperm.xlu2 %738, %v883_v16  }
  0x9a   :  { %412 = vperm.xlu1 %736, %v871_v13  }
  0x9d   :  { %v997_v58 = vpop.permute.xlu0 %79 }
  0x9e   :  { %v174_v60 = vpop.permute.xlu2 %173  ;;  %v1000_v61 = vpop.permute.xlu1 %146 }
  0x9f   :  { %vm202_vm7 = vcmp.eq.s32.totalorder %v933_v30, %v174_v60  ;;  %vm193_vm0 = vcmp.eq.s32.totalorder %v933_v30, %v1000_v61 }
  0xa0   :  { %v625_v63 = vsel %vm202_vm7, 1.0, %v778_v33  ;;  %v616_v61 = vsel %vm193_vm0, 1.0, %v778_v33 }
  0xa1   :  { %v1007_v0 = vadd.f32 %v625_v63, %v609_v59  ;;  %741 = vset.pattern.permute.xlu2 %v777_v19 }
  0xa2   :  { %291 = vperm.xlu2 %741, %v856_v10   ;;  %740 = vset.pattern.permute.xlu1 %v777_v19 }
  0xa3   :  { %276 = vperm.xlu1 %740, %v849_v9   ;;  %v484_v9 = vld [vmem:[%s1221_s1 + $0x18] sm:$0xff] }
  0xa4   :  { %701 = vmatpush.msra.mxu2 %v484_v9  ;;  %702 = vmatpush.msra.mxu3 %v484_v9 }
  0xa5   :  { %700 = vmatpush.msra.mxu1 %v484_v9  ;;  %513 = vmatpush.msra.mxu0 %v484_v9 }
  0xa6   :  { %v1024_v6 = vpop.permute.xlu2 %182  ;;  %v156_v7 = vpop.permute.xlu1 %155  ;;  %704 = vmatpush.msra.mxu2 %v483_v15  ;;  %705 = vmatpush.msra.mxu3 %v483_v15 }
  0xa7   :  { %vm196_vm9 = vcmp.eq.s32.totalorder %v933_v30, %v156_v7  ;;  %v1030_v11 = vpop.permute.xlu0 %394  ;;  %703 = vmatpush.msra.mxu1 %v483_v15  ;;  %514 = vmatpush.msra.mxu0 %v483_v15  ;;  %vm205_vm7 = vcmp.eq.s32.totalorder %v933_v30, %v1024_v6  ;;  %v613_v6 = vsel %vm94_vm11, 1.0, %v778_v33 }
  0xa8   :  { %v619_v13 = vsel %vm196_vm9, 1.0, %v778_v33  ;;  %707 = vmatpush.msra.mxu2 %v482_v17  ;;  %708 = vmatpush.msra.mxu3 %v482_v17  ;;  %vm425_vm4 = vcmp.eq.s32.totalorder %v933_v30, %v1030_v11  ;;  %v628_v55 = vsel %vm205_vm7, 1.0, %v778_v33 }
  0xa9   :  { %v1034_v14 = vadd.f32 %v619_v13, %v603_v12  ;;  %706 = vmatpush.msra.mxu1 %v482_v17  ;;  %515 = vmatpush.msra.mxu0 %v482_v17 }
  0xaa   :  { %742 = vset.pattern.permute.xlu2 %v776_v18  ;;  %710 = vmatpush.msra.mxu2 %v481_v20 }
  0xab   :  { %376 = vperm.xlu2 %742, %v810_v1   ;;  %303 = vperm.xlu1 %740, %v883_v16  }
  0xac   :  { %711 = vmatpush.msra.mxu3 %v481_v20  ;;  %709 = vmatpush.msra.mxu1 %v481_v20 }
  0xad   :  { %516 = vmatpush.msra.mxu0 %v481_v20 }
  0xae   :  { %v162_v27 = vpop.permute.xlu1 %161 }
  0xaf   :  { %vm198_vm12 = vcmp.eq.s32.totalorder %v933_v30, %v162_v27  ;;  %v1053_v1 = vpop.permute.xlu2 %294 }
  0xb0   :  { %v621_v28 = vsel %vm198_vm12, 1.0, %v778_v33  ;;  %v153_v29 = vpop.permute.xlu0 %152  ;;  %vm317_vm8 = vcmp.eq.s32.totalorder %v933_v30, %v1053_v1 }
  0xb1   :  { %v1057_v32 = vadd.f32 %v621_v28, %v605_v21  ;;  %vm195_vm13 = vcmp.eq.s32.totalorder %v933_v30, %v153_v29  ;;  %v644_v57 = vsel %vm317_vm8, 1.0, %v778_v33 }
  0xb2   :  { %v618_v34 = vsel %vm195_vm13, 1.0, %v778_v33 }
  0xb3   :  { %v1062_v35 = vadd.f32 %v618_v34, %v602_v24  ;;  %415 = vperm.xlu2 %742, %v883_v16   ;;  %743 = vset.pattern.permute.xlu1 %v776_v18  ;;  %v607_v16 = vsel %vm88_vm14, 1.0, %v778_v33  ;;  %vm81_vm14 = vcmp.eq.s32.totalorder %v933_v30, %v921_v25 }
  0xb4   :  { %403 = vperm.xlu1 %743, %v856_v10   ;;  %v600_v27 = vsel %vm81_vm14, 1.0, %v778_v33 }
  0xb5   :  { %v241_v29 = vadd.f32 %v616_v61, %v600_v27 }
  0xb6   :  { %v171_v36 = vpop.permute.xlu1 %170 }
  0xb7   :  { %v1069_v39 = vpop.permute.xlu2 %258  ;;  %vm201_vm2 = vcmp.eq.s32.totalorder %v933_v30, %v171_v36 }
  0xb8   :  { %v168_v40 = vpop.permute.xlu0 %167 }
  0xb9   :  { %vm200_vm15 = vcmp.eq.s32.totalorder %v933_v30, %v168_v40 }
  0xba   :  { %v623_v41 = vsel %vm200_vm15, 1.0, %v778_v33 }
  0xbb   :  { %v1074_v10 = vadd.f32 %v623_v41, %v607_v16  ;;  %745 = vset.pattern.permute.xlu2 %v777_v19 }
  0xbc   :  { %279 = vperm.xlu2 %745, %v844_v8   ;;  %744 = vset.pattern.permute.xlu1 %v777_v19  ;;  %v608_v19 = vsel %vm89_vm3, 1.0, %v778_v33 }
  0xbd   :  { %267 = vperm.xlu1 %744, %v828_v5   ;;  %v624_v5 = vsel %vm201_vm2, 1.0, %v778_v33  ;;  %vm305_vm2 = vcmp.eq.s32.totalorder %v933_v30, %v1069_v39 }
  0xbe   :  { %v180_v31 = vpop.permute.xlu1 %179  ;;  %v249_v50 = vadd.f32 %v624_v5, %v608_v19  ;;  %v632_v28 = vsel %vm305_vm2, 1.0, %v778_v33 }
  0xbf   :  { %vm204_vm1 = vcmp.eq.s32.totalorder %v933_v30, %v180_v31  ;;  %v1085_v45 = vpop.permute.xlu2 %285  ;;  %v353_v36 = vadd.f32 %v632_v28, %v241_v29 }
  0xc0   :  { %v627_v43 = vsel %vm204_vm1, 1.0, %v778_v33  ;;  %v1087_v46 = vpop.permute.xlu0 %176 }
  0xc1   :  { %v1089_v47 = vadd.f32 %v627_v43, %v611_v42  ;;  %vm203_vm8 = vcmp.eq.s32.totalorder %v933_v30, %v1087_v46 }
  0xc5   :  { %746 = vset.pattern.permute.xlu1 %v776_v18  ;;  %v656_v18 = vsel %vm425_vm4, 1.0, %v778_v33  ;;  %vm314_vm4 = vcmp.eq.s32.totalorder %v933_v30, %v1085_v45 }
  0xc6   :  { %391 = vperm.xlu1 %746, %v844_v8   ;;  %v612_v8 = vsel %vm93_vm6, 1.0, %v778_v33  ;;  %v641_v16 = vsel %vm314_vm4, 1.0, %v778_v33 }
  0xc7   :  { %v283_v23 = vpop.permute.xlu1 %282  ;;  %v253_v49 = vadd.f32 %v628_v55, %v612_v8  ;;  %v362_v42 = vadd.f32 %v641_v16, %v1007_v0 }
  0xc8   :  { %vm313_vm5 = vcmp.eq.s32.totalorder %v933_v30, %v283_v23  ;;  %v186_v51 = vpop.permute.xlu0 %185  ;;  %v383_v52 = vpop.permute.xlu2 %382 }
  0xc9   :  { %v640_v22 = vsel %vm313_vm5, 1.0, %v778_v33  ;;  %v365_v62 = vadd.f32 %v644_v57, %v253_v49  ;;  %vm206_vm10 = vcmp.eq.s32.totalorder %v933_v30, %v186_v51  ;;  %vm421_vm13 = vcmp.eq.s32.totalorder %v933_v30, %v383_v52 }
  0xca   :  { %v361_v53 = vadd.f32 %v640_v22, %v249_v50  ;;  %v629_v4 = vsel %vm206_vm10, 1.0, %v778_v33  ;;  %v652_v15 = vsel %vm421_vm13, 1.0, %v778_v33 }
  0xcb   :  { %v254_v11 = vadd.f32 %v629_v4, %v613_v6 }
  0xcc   :  { %v473_v56 = vadd.f32 %v656_v18, %v361_v53  ;;  %v626_v18 = vsel %vm203_vm8, 1.0, %v778_v33 }
  0xce   :  { %541 = vmatmul.f32.vlgmr.msra.gmra.mxu2 %v473_v56 }
  0xd0   :  { %v1112_v59 = vpop.permute.xlu0 %188  ;;  %v407_v60 = vpop.permute.xlu1 %406 }
  0xd1   :  { %vm429_vm9 = vcmp.eq.s32.totalorder %v933_v30, %v407_v60  ;;  %v410_v63 = vpop.permute.xlu2 %409  ;;  %vm207_vm14 = vcmp.eq.s32.totalorder %v933_v30, %v1112_v59 }
  0xd2   :  { %v660_v2 = vsel %vm429_vm9, 1.0, %v778_v33  ;;  %vm430_vm12 = vcmp.eq.s32.totalorder %v933_v30, %v410_v63  ;;  %vm91_vm9 = vcmp.eq.s32.totalorder %v933_v30, %v948_v38  ;;  %v630_v59 = vsel %vm207_vm14, 1.0, %v778_v33 }
  0xd3   :  { %v477_v3 = vadd.f32 %v660_v2, %v365_v62  ;;  %v661_v48 = vsel %vm430_vm12, 1.0, %v778_v33  ;;  %v610_v22 = vsel %vm91_vm9, 1.0, %v778_v33 }
  0xd4   :  { %v251_v8 = vadd.f32 %v626_v18, %v610_v22 }
  0xd5   :  { %553 = vmatmul.f32.vlgmr.msra.gmra.mxu3 %v477_v3 }
  0xd9   :  { %v298_v7 = vpop.permute.xlu0 %297  ;;  %v1123_v9 = vpop.permute.xlu2 %273 }
  0xda   :  { %vm318_vm15 = vcmp.eq.s32.totalorder %v933_v30, %v298_v7  ;;  %v271_v12 = vpop.permute.xlu1 %270  ;;  %vm310_vm12 = vcmp.eq.s32.totalorder %v933_v30, %v1123_v9 }
  0xdb   :  { %v645_v13 = vsel %vm318_vm15, 1.0, %v778_v33  ;;  %vm309_vm1 = vcmp.eq.s32.totalorder %v933_v30, %v271_v12  ;;  %v637_v57 = vsel %vm310_vm12, 1.0, %v778_v33 }
  0xdc   :  { %v366_v17 = vadd.f32 %v645_v13, %v254_v11  ;;  %v636_v20 = vsel %vm309_vm1, 1.0, %v778_v33  ;;  %v358_v62 = vadd.f32 %v637_v57, %v1057_v32  ;;  %vm95_vm1 = vcmp.eq.s32.totalorder %v933_v30, %v925_v26 }
  0xdd   :  { %v357_v25 = vadd.f32 %v636_v20, %v958_v44  ;;  %v614_v7 = vsel %vm95_vm1, 1.0, %v778_v33 }
  0xde   :  { %v478_v1 = vadd.f32 %v661_v48, %v366_v17  ;;  %v255_v9 = vadd.f32 %v630_v59, %v614_v7 }
  0xdf   :  { %v469_v21 = vadd.f32 %v652_v15, %v357_v25 }
  0xe0   :  { %556 = vmatmul.f32.gmra.mxu3 %v478_v1 }
  0xe1   :  { %529 = vmatmul.f32.vlgmr.msra.gmra.mxu1 %v469_v21  ;;  %v301_v24 = vpop.permute.xlu2 %300  ;;  %v265_v40 = vpop.permute.xlu0 %264 }
  0xe2   :  { %v371_v34 = vpop.permute.xlu1 %370  ;;  %vm307_vm13 = vcmp.eq.s32.totalorder %v933_v30, %v265_v40  ;;  %vm319_vm2 = vcmp.eq.s32.totalorder %v933_v30, %v301_v24 }
  0xe3   :  { %vm417_vm3 = vcmp.eq.s32.totalorder %v933_v30, %v371_v34  ;;  %v634_v49 = vsel %vm307_vm13, 1.0, %v778_v33 }
  0xe4   :  { %v648_v39 = vsel %vm417_vm3, 1.0, %v778_v33  ;;  %v355_v2 = vadd.f32 %v634_v49, %v1062_v35  ;;  %v646_v35 = vsel %vm319_vm2, 1.0, %v778_v33 }
  0xe5   :  { %v465_v44 = vadd.f32 %v648_v39, %v353_v36  ;;  %v367_v12 = vadd.f32 %v646_v35, %v255_v9 }
  0xe7   :  { %517 = vmatmul.f32.vlgmr.msra.gmra.mxu0 %v465_v44 }
  0xea   :  { %v398_v41 = vpop.permute.xlu1 %397  ;;  %v401_v31 = vpop.permute.xlu2 %400 }
  0xeb   :  { %vm426_vm5 = vcmp.eq.s32.totalorder %v933_v30, %v398_v41  ;;  %v374_v19 = vpop.permute.xlu0 %373  ;;  %vm427_vm10 = vcmp.eq.s32.totalorder %v933_v30, %v401_v31 }
  0xec   :  { %v657_v43 = vsel %vm426_vm5, 1.0, %v778_v33  ;;  %vm418_vm6 = vcmp.eq.s32.totalorder %v933_v30, %v374_v19  ;;  %v658_v46 = vsel %vm427_vm10, 1.0, %v778_v33 }
  0xed   :  { %v474_v5 = vadd.f32 %v657_v43, %v362_v42  ;;  %v649_v51 = vsel %vm418_vm6, 1.0, %v778_v33 }
  0xef   :  { %544 = vmatmul.f32.gmra.mxu2 %v474_v5 }
  0xf3   :  { %v192_v23 = vpop.permute.xlu2 %191  ;;  %v262_v45 = vpop.permute.xlu1 %261 }
  0xf4   :  { %vm306_vm7 = vcmp.eq.s32.totalorder %v933_v30, %v262_v45  ;;  %v389_v13 = vpop.permute.xlu0 %388  ;;  %vm208_vm6 = vcmp.eq.s32.totalorder %v933_v30, %v192_v23 }
  0xf5   :  { %v633_v50 = vsel %vm306_vm7, 1.0, %v778_v33  ;;  %vm423_vm4 = vcmp.eq.s32.totalorder %v933_v30, %v389_v13  ;;  %vm96_vm7 = vcmp.eq.s32.totalorder %v933_v30, %v997_v58  ;;  %v631_v61 = vsel %vm208_vm6, 1.0, %v778_v33 }
  0xf6   :  { %v354_v0 = vadd.f32 %v633_v50, %v944_v37  ;;  %v654_v20 = vsel %vm423_vm4, 1.0, %v778_v33  ;;  %v615_v21 = vsel %vm96_vm7, 1.0, %v778_v33 }
  0xf7   :  { %v256_v29 = vadd.f32 %v631_v61, %v615_v21 }
  0xf8   :  { %v466_v52 = vadd.f32 %v649_v51, %v354_v0 }
  0xfa   :  { %520 = vmatmul.f32.gmra.mxu0 %v466_v52 }
  0xfb   :  { %v289_v53 = vpop.permute.xlu1 %288 }
  0xfc   :  { %vm315_vm11 = vcmp.eq.s32.totalorder %v933_v30, %v289_v53  ;;  %v292_v55 = vpop.permute.xlu2 %291  ;;  %v380_v41 = vpop.permute.xlu0 %379 }
  0xfd   :  { %v642_v37 = vsel %vm315_vm11, 1.0, %v778_v33  ;;  %vm316_vm10 = vcmp.eq.s32.totalorder %v933_v30, %v292_v55  ;;  %vm420_vm12 = vcmp.eq.s32.totalorder %v933_v30, %v380_v41 }
  0xfe   :  { %v363_v56 = vadd.f32 %v642_v37, %v251_v8  ;;  %v643_v36 = vsel %vm316_vm10, 1.0, %v778_v33 }
  0xff   :  { %v364_v44 = vadd.f32 %v643_v36, %v1089_v47  ;;  %v651_v47 = vsel %vm420_vm12, 1.0, %v778_v33 }
 0x100   :  { %v475_v38 = vadd.f32 %v658_v46, %v363_v56 }
 0x102   :  { %547 = vmatmul.f32.gmra.mxu2 %v475_v38 }
 0x104   :  { %v386_v60 = vpop.permute.xlu1 %385 }
 0x105   :  { %vm422_vm15 = vcmp.eq.s32.totalorder %v933_v30, %v386_v60  ;;  %v377_v63 = vpop.permute.xlu2 %376 }
 0x106   :  { %v653_v3 = vsel %vm422_vm15, 1.0, %v778_v33  ;;  %vm419_vm0 = vcmp.eq.s32.totalorder %v933_v30, %v377_v63 }
 0x107   :  { %v650_v4 = vsel %vm419_vm0, 1.0, %v778_v33  ;;  %v470_v6 = vadd.f32 %v653_v3, %v358_v62 }
 0x108   :  { %v467_v32 = vadd.f32 %v650_v4, %v355_v2 }
 0x109   :  { %532 = vmatmul.f32.gmra.mxu1 %v470_v6 }
 0x10a   :  { %523 = vmatmul.f32.gmra.mxu0 %v467_v32 }
 0x10c   :  { %v413_v11 = vpop.permute.xlu1 %412 }
 0x10d   :  { %vm431_vm3 = vcmp.eq.s32.totalorder %v933_v30, %v413_v11  ;;  %v416_v1 = vpop.permute.xlu2 %415 }
 0x10e   :  { %v662_v26 = vsel %vm431_vm3, 1.0, %v778_v33  ;;  %vm432_vm8 = vcmp.eq.s32.totalorder %v933_v30, %v416_v1 }
 0x10f   :  { %v479_v48 = vadd.f32 %v662_v26, %v367_v12  ;;  %v663_v24 = vsel %vm432_vm8, 1.0, %v778_v33 }
 0x111   :  { %559 = vmatmul.f32.gmra.mxu3 %v479_v48 }
 0x115   :  { %v277_v15 = vpop.permute.xlu1 %276 }
 0x116   :  { %vm311_vm5 = vcmp.eq.s32.totalorder %v933_v30, %v277_v15  ;;  %v280_v42 = vpop.permute.xlu2 %279 }
 0x117   :  { %v638_v17 = vsel %vm311_vm5, 1.0, %v778_v33  ;;  %vm312_vm14 = vcmp.eq.s32.totalorder %v933_v30, %v280_v42 }
 0x118   :  { %v359_v25 = vadd.f32 %v638_v17, %v983_v54  ;;  %v639_v23 = vsel %vm312_vm14, 1.0, %v778_v33 }
 0x119   :  { %v360_v50 = vadd.f32 %v639_v23, %v1074_v10 }
 0x11a   :  { %v471_v27 = vadd.f32 %v654_v20, %v359_v25 }
 0x11c   :  { %535 = vmatmul.f32.gmra.mxu1 %v471_v27 }
 0x11d   :  { %v304_v28 = vpop.permute.xlu1 %303 }
 0x11e   :  { %vm320_vm9 = vcmp.eq.s32.totalorder %v933_v30, %v304_v28 }
 0x11f   :  { %v647_v54 = vsel %vm320_vm9, 1.0, %v778_v33 }
 0x120   :  { %v368_v34 = vadd.f32 %v647_v54, %v256_v29 }
 0x122   :  { %v480_v58 = vadd.f32 %v663_v24, %v368_v34 }
 0x124   :  { %562 = vmatmul.f32.gmra.mxu3 %v480_v58 }
 0x126   :  { %v404_v39 = vpop.permute.xlu1 %403 }
 0x127   :  { %vm428_vm11 = vcmp.eq.s32.totalorder %v933_v30, %v404_v39 }
 0x128   :  { %v659_v40 = vsel %vm428_vm11, 1.0, %v778_v33 }
 0x129   :  { %v476_v16 = vadd.f32 %v659_v40, %v364_v44 }
 0x12b   :  { %550 = vmatmul.f32.gmra.mxu2 %v476_v16 }
 0x12f   :  { %v268_v31 = vpop.permute.xlu1 %267 }
 0x130   :  { %vm308_vm13 = vcmp.eq.s32.totalorder %v933_v30, %v268_v31 }
 0x131   :  { %v635_v43 = vsel %vm308_vm13, 1.0, %v778_v33 }
 0x132   :  { %v356_v5 = vadd.f32 %v635_v43, %v1034_v14  ;;  %v747_v14 = vld [vmem:[%s1222_s2] ss:$0 sm:$0xff]  ;;  %s779_s2 = smov [#allocation2]  }
 0x133   :  { %s586_s21 = sshll.u32 %s779_s2, 4  ;;  %s587_s21 = int_to_ptr.vmem [resolvable:$true] %s586_s21 }
 0x134   :  { %v468_v19 = vadd.f32 %v651_v47, %v356_v5 }
 0x136   :  { %526 = vmatmul.f32.gmra.mxu0 %v468_v19 }
 0x138   :  { %v392_v45 = vpop.permute.xlu1 %391 }
 0x139   :  { %vm424_vm15 = vcmp.eq.s32.totalorder %v933_v30, %v392_v45 }
 0x13a   :  { %v655_v51 = vsel %vm424_vm15, 1.0, %v778_v33 }
 0x13b   :  { %v472_v0 = vadd.f32 %v655_v51, %v360_v50 }
 0x13d   :  { %538 = vmatmul.f32.gmra.mxu1 %v472_v0 }
 0x151   :  { %v542_v52 = vpop.f32.mrf.mxu2 }
 0x152   :  { %v543_v18 = vadd.f32 %v747_v14, %v542_v52 }
 0x154   :  { %574 = vst [vmem:[#allocation2 + $0x40] sm:$0xff] %v543_v18 }
 0x158   :  { %v554_v22 = vpop.f32.mrf.mxu3 }
 0x159   :  { %v555_v53 = vadd.f32 %v747_v14, %v554_v22 }
 0x15b   :  { %578 = vst [vmem:[#allocation2 + $0x60] sm:$0xff] %v555_v53 }
 0x15e   :  { %v530_v8 = vpop.f32.mrf.mxu1 }
 0x15f   :  { %v531_v55 = vadd.f32 %v747_v14, %v530_v8 }
 0x161   :  { %570 = vst [vmem:[#allocation2 + $0x20] sm:$0xff] %v531_v55 }
 0x163   :  { %v557_v10 = vpop.f32.mrf.mxu3 }
 0x164   :  { %v558_v46 = vadd.f32 %v747_v14, %v557_v10  ;;  %v518_v30 = vpop.f32.mrf.mxu0 }
 0x165   :  { %v519_v37 = vadd.f32 %v747_v14, %v518_v30 }
 0x166   :  { %579 = vst [vmem:[#allocation2 + $0x68] sm:$0xff] %v558_v46 }
 0x167   :  { %566 = vst [vmem:[#allocation2] sm:$0xff] %v519_v37 }
 0x172   :  { %v545_v33 = vpop.f32.mrf.mxu2 }
 0x173   :  { %v546_v56 = vadd.f32 %v747_v14, %v545_v33 }
 0x175   :  { %575 = vst [vmem:[#allocation2 + $0x48] sm:$0xff] %v546_v56 }
 0x177   :  { %v521_v38 = vpop.f32.mrf.mxu0 }
 0x178   :  { %v522_v57 = vadd.f32 %v747_v14, %v521_v38 }
 0x17a   :  { %567 = vst [vmem:[#allocation2 + $0x8] sm:$0xff] %v522_v57 }
 0x185   :  { %v548_v49 = vpop.f32.mrf.mxu2 }
 0x186   :  { %v549_v60 = vadd.f32 %v747_v14, %v548_v49  ;;  %v533_v62 = vpop.f32.mrf.mxu1 }
 0x187   :  { %v534_v63 = vadd.f32 %v747_v14, %v533_v62  ;;  %v524_v2 = vpop.f32.mrf.mxu0 }
 0x188   :  { %576 = vst [vmem:[#allocation2 + $0x50] sm:$0xff] %v549_v60  ;;  %v525_v3 = vadd.f32 %v747_v14, %v524_v2 }
 0x189   :  { %571 = vst [vmem:[#allocation2 + $0x28] sm:$0xff] %v534_v63 }
 0x18a   :  { %568 = vst [vmem:[#allocation2 + $0x10] sm:$0xff] %v525_v3 }
 0x194   :  { %v560_v4 = vpop.f32.mrf.mxu3 }
 0x195   :  { %v561_v6 = vadd.f32 %v747_v14, %v560_v4 }
 0x197   :  { %580 = vst [vmem:[#allocation2 + $0x70] sm:$0xff] %v561_v6 }
 0x199   :  { %v536_v59 = vpop.f32.mrf.mxu1 }
 0x19a   :  { %v537_v32 = vadd.f32 %v747_v14, %v536_v59 }
 0x19c   :  { %572 = vst [vmem:[#allocation2 + $0x30] sm:$0xff] %v537_v32 }
 0x1a7   :  { %v563_v7 = vpop.f32.mrf.mxu3 }
 0x1a8   :  { %v564_v35 = vadd.f32 %v747_v14, %v563_v7 }
 0x1aa   :  { %581 = vst [vmem:[#allocation2 + $0x78] sm:$0xff] %v564_v35 }
 0x1ae   :  { %v551_v9 = vpop.f32.mrf.mxu2 }
 0x1af   :  { %v552_v11 = vadd.f32 %v747_v14, %v551_v9 }
 0x1b1   :  { %577 = vst [vmem:[#allocation2 + $0x58] sm:$0xff] %v552_v11 }
 0x1b3   :  { %v527_v12 = vpop.f32.mrf.mxu0 }
 0x1b4   :  { %v528_v26 = vadd.f32 %v747_v14, %v527_v12 }
 0x1b6   :  { %569 = vst [vmem:[#allocation2 + $0x18] sm:$0xff] %v528_v26 }
 0x1ba   :  { %v539_v48 = vpop.f32.mrf.mxu1 }
 0x1bb   :  { %v540_v13 = vadd.f32 %v747_v14, %v539_v48 }
 0x1bd   :  { %573 = vst [vmem:[#allocation2 + $0x38] sm:$0xff] %v540_v13 }
 0x1be   :  { %594 = dma.vmem_to_hbm [thread:$0]  %s587_s21, 2048, %s589_s24, [#allocation3], %s780_s25, %s780_s25, %s781_s26  }
 0x1bf   :  { %772 = dma.done.wait [#allocation3], 2048  }
 0x1c0   :  { %773 = vsyncadd [#allocation3], 4294965248 }
 0x1c1   :  { %599 = vsyncpa [#allocation3], 1 }

</bundles_post_ra>
